<compile_context>
chip_gen: v7x
topology: tpu7x:2x2x1
jax: 0.10.0
libtpu: 0.0.40
codegen_flags: <defaults>
</compile_context>

<pallas_src>
import functools

import jax
import jax.numpy as jnp
from jax.experimental import pallas as pl
from jax.experimental.pallas import tpu as pltpu

_LANE = 128


def _round_up(v, m):
    return ((v + m - 1) // m) * m


def _cdiv(a, b):
    return -(-a // b)


def _classifier_mlp_kernel(x_ref, *refs, n_layers, d, out_dim, final_sigmoid):
    """refs = (W1_aug, ..., Wn_aug, out_ref, pad_scratch).

    x_ref    : (TB, d)          f32, raw batch tile (d = original input_dim)
    W_i_aug  : (Din_pad, Dout_pad) bf16, VMEM-resident (bias folded via ones lane)
    out_ref  : (TB, out_dim)    f32, narrow output (no lane padding in HBM)
    pad_ref  : (TB, d_pad)      bf16 staging scratch
    """
    w_refs = refs[:n_layers]
    out_ref = refs[n_layers]
    pad_ref = refs[n_layers + 1]
    tb, d_pad = pad_ref.shape

    # Stage the raw tile into the lane-padded bf16 buffer.  Lane `d` carries a
    # constant 1.0 (the bias row of each augmented weight); lanes > d are 0.
    # Rewritten every step (cheap VMEM stores) so it is correct when the
    # "parallel" batch axis is sharded across TensorCores (program_id == 0
    # never executes on the second core).
    lane_idx = jax.lax.broadcasted_iota(jnp.int32, (tb, d_pad), 1)
    pad_ref[...] = (lane_idx == d).astype(jnp.bfloat16)          # ones lane + zeros
    pad_ref[:, :d] = x_ref[...].astype(jnp.bfloat16)             # data lanes

    h = pad_ref[...]                                             # (TB, d_pad) bf16
    acc = None
    for li in range(n_layers):
        # MXU matmul, f32 accumulation.  Bias is folded into the weight via the
        # ones lane; the ones lane is carried forward by an extra weight column.
        acc = jnp.dot(h, w_refs[li][...], preferred_element_type=jnp.float32)
        if li < n_layers - 1:
            acc = jnp.where(acc > 0, acc, 0.2 * acc)             # LeakyReLU(0.2)
            # TODO(synk): Dropout(0.5) is stochastic at train time; forward here
            # uses eval-mode semantics (identity), matching inference.
            h = acc.astype(jnp.bfloat16)

    y = acc[:, :out_dim]                                         # drop padding lanes
    if final_sigmoid:
        y = jax.nn.sigmoid(y)
    out_ref[...] = y.astype(out_ref.dtype)


def prepare_classifier_params(weights, biases, input_dim, st_ed):
    """One-time parameter prep.

    * Folds the column drop (torch `cat(x[:, :st], x[:, ed:])`) into W1 by
      zeroing rows [st, ed) of a full-input-width weight.
    * Folds every bias into its weight via a constant "ones" lane threaded
      through the padding lanes of each activation.
    * Zero-pads all feature dims to a multiple of 128 lanes and casts to bf16.
    """
    st, ed = st_ed
    n_layers = len(weights)

    w1 = jnp.asarray(weights[0], jnp.float32)
    h1 = w1.shape[1]
    w1_full = jnp.zeros((input_dim, h1), jnp.float32)
    w1_full = w1_full.at[:st].set(w1[:st])
    w1_full = w1_full.at[ed:].set(w1[st:])
    folded = [w1_full] + [jnp.asarray(w, jnp.float32) for w in weights[1:]]

    padded_w = []
    prev_true = input_dim                            # ones-lane index of layer input
    prev_pad = _round_up(input_dim + 1, _LANE)       # +1 lane for the ones carrier
    for li, (w, b) in enumerate(zip(folded, biases)):
        din, dout = w.shape
        last = li == n_layers - 1
        cur_pad = _round_up(dout if last else dout + 1, _LANE)
        wa = jnp.zeros((prev_pad, cur_pad), jnp.float32)
        wa = wa.at[:din, :dout].set(w)
        wa = wa.at[prev_true, :dout].set(jnp.asarray(b, jnp.float32))  # bias row
        if not last:
            wa = wa.at[prev_true, dout].set(1.0)     # carry the ones lane forward
        padded_w.append(wa.astype(jnp.bfloat16))
        prev_true, prev_pad = dout, cur_pad

    out_dim = int(folded[-1].shape[1])
    return padded_w, out_dim


def classifier_mlp_pallas(x, padded_w, out_dim, final_sigmoid, *, tb_rows=4096):
    """Batch-gridded Pallas MLP: raw x tiles stream through, params stay resident."""
    b, d = x.shape
    n_layers = len(padded_w)
    d_pad = padded_w[0].shape[0]

    # Large batch tile to amortize per-step overhead (~0.35us); multiple of 16
    # (bf16 sublane pack); clamp so there are >=2 grid steps when batch allows
    # it (v7x has 2 TensorCores that shard the "parallel" axis).
    tb = min(tb_rows, max(16, _round_up(_cdiv(b, 2), 16)))
    grid = _cdiv(b, tb)   # ragged tail handled by Pallas boundary-block clipping

    # Explicit scoped-VMEM budget (v7x: 64 MiB physical, 32 MiB default scoped).
    lane = lambda n: _round_up(max(n, 1), _LANE)
    vmem_bytes = (
        2 * tb * lane(d) * x.dtype.itemsize          # double-buffered x tiles
        + 2 * tb * lane(out_dim) * 4                 # double-buffered out tiles
        + tb * d_pad * 2                             # bf16 staging scratch
        + 2 * sum(int(w.size) * 2 for w in padded_w)  # resident bf16 weights
        + n_layers * tb * _LANE * 6                  # compiler spill of (tb,128) interm.
    )
    vmem_limit = int(min(vmem_bytes * 1.5 + (4 << 20), 64 << 20))

    kernel = functools.partial(
        _classifier_mlp_kernel,
        n_layers=n_layers, d=d, out_dim=out_dim, final_sigmoid=final_sigmoid)

    in_specs = [pl.BlockSpec((tb, d), lambda i: (i, 0))]          # raw x, no pre-pad
    in_specs += [pl.BlockSpec(w.shape, lambda i: (0, 0)) for w in padded_w]

    return pl.pallas_call(
        kernel,
        out_shape=jax.ShapeDtypeStruct((b, out_dim), jnp.float32),
        grid=(grid,),
        in_specs=in_specs,
        out_specs=pl.BlockSpec((tb, out_dim), lambda i: (i, 0)),  # narrow output
        scratch_shapes=[pltpu.VMEM((tb, d_pad), jnp.bfloat16)],
        compiler_params=pltpu.CompilerParams(
            dimension_semantics=("parallel",),
            vmem_limit_bytes=vmem_limit),
    )(x, *padded_w)


def make_classifier_params(key, input_dim, dis_dims, st_ed):
    """Deterministic parameter init mirroring the PyTorch module's layer shapes."""
    st, ed = st_ed
    width = ed - st
    dim = input_dim - width

    layer_dims = []
    d = dim
    for item in dis_dims:
        layer_dims.append((d, item))
        d = item
    if width == 1 or width == 2:
        layer_dims.append((d, 1))
    else:
        layer_dims.append((d, width))

    weights, biases = [], []
    for din, dout in layer_dims:
        key, kw, kb = jax.random.split(key, 3)
        bound = 1.0 / jnp.sqrt(din)
        weights.append(jax.random.uniform(kw, (din, dout), jnp.float32, -bound, bound))
        biases.append(jax.random.uniform(kb, (dout,), jnp.float32, -bound, bound))
    return weights, biases


def classifier_forward(x, prepared, st_ed, *, tb_rows=4096):
    """Full Classifier.forward: label extraction (glue) + Pallas MLP."""
    st, ed = st_ed
    width = ed - st
    padded_w, out_dim = prepared

    if width == 1:
        label = x[:, st:ed]                              # (B, 1), as in the torch module
    else:
        label = jnp.argmax(x[:, st:ed], axis=-1)         # (B,)

    y = classifier_mlp_pallas(x, padded_w, out_dim,
                              final_sigmoid=(width == 2), tb_rows=tb_rows)
    if width in (1, 2):
        return y.reshape(-1), label
    return y, label


def classifier_reference(x, weights, biases, st_ed):
    """Pure-JAX f32 reference of the torch module (eval mode)."""
    st, ed = st_ed
    width = ed - st
    if width == 1:
        label = x[:, st:ed]
    else:
        label = jnp.argmax(x[:, st:ed], axis=-1)
    h = jnp.concatenate([x[:, :st], x[:, ed:]], axis=1)
    n = len(weights)
    for i, (w, bb) in enumerate(zip(weights, biases)):
        h = h @ w + bb
        if i < n - 1:
            h = jnp.where(h > 0, h, 0.2 * h)
    if width == 2:
        h = jax.nn.sigmoid(h)
    if width in (1, 2):
        return h.reshape(-1), label
    return h, label


if __name__ == "__main__":
    key = jax.random.PRNGKey(0)

    def run_case(key, B, input_dim, dis_dims, st_ed, tol):
        key, kx, kp = jax.random.split(key, 3)
        x = jax.random.normal(kx, (B, input_dim), dtype=jnp.float32)
        weights, biases = make_classifier_params(kp, input_dim, dis_dims, st_ed)
        prepared = prepare_classifier_params(weights, biases, input_dim, st_ed)

        y, label = classifier_forward(x, prepared, st_ed)
        jax.block_until_ready(y)
        jax.block_until_ready(label)

        y_ref, label_ref = classifier_reference(x, weights, biases, st_ed)
        assert y.shape == y_ref.shape
        assert bool(jnp.all(label == label_ref))
        err = float(jnp.max(jnp.abs(y - y_ref)))
        # bf16 MXU inputs/weights with f32 accumulation -> small drift vs f32 ref.
        assert err < tol, f"max|err|={err} tol={tol}"
        return key

    # width == 2 -> Linear(..., 1) + Sigmoid head, label = argmax, output (B,)
    key = run_case(key, B=8, input_dim=34, dis_dims=(64, 32), st_ed=(8, 10), tol=5e-2)
    # width > 2  -> multi-logit head (no sigmoid), output (B, width)
    key = run_case(key, B=8, input_dim=34, dis_dims=(64, 32), st_ed=(8, 13), tol=1e-1)

    print("KERNEL_OK")
</pallas_src>

<mosaic_0001>
module attributes {stable_mosaic.version = 11 : i64} {
  func.func @_classifier_mlp_kernel(%arg0: i32, %arg1: memref<16x34xf32, #tpu.memory_space<vmem>>, %arg2: memref<128x128xbf16, #tpu.memory_space<vmem>>, %arg3: memref<128x128xbf16, #tpu.memory_space<vmem>>, %arg4: memref<128x128xbf16, #tpu.memory_space<vmem>>, %arg5: memref<16x1xf32, #tpu.memory_space<vmem>>, %arg6: memref<16x128xbf16, #tpu.memory_space<vmem>>) attributes {dimension_semantics = [#tpu.dimension_semantics<parallel>], iteration_bounds = array<i64: 1>, scalar_prefetch = 0 : i64, scratch_operands = 1 : i64, tpu.core_type = #tpu.core_type<tc>, window_params = [{transform_indices = @transform_0, window_bounds = array<i64: 16, 34>}, {pipeline_mode = #tpu.pipeline_mode<synchronous>, transform_indices = @transform_1, window_bounds = array<i64: 128, 128>}, {pipeline_mode = #tpu.pipeline_mode<synchronous>, transform_indices = @transform_2, window_bounds = array<i64: 128, 128>}, {pipeline_mode = #tpu.pipeline_mode<synchronous>, transform_indices = @transform_3, window_bounds = array<i64: 128, 128>}, {transform_indices = @transform_4, window_bounds = array<i64: 16, 1>}]} {
    %0 = tpu.iota {dimensions = array<i32: 1>} : vector<16x128xi32>
    %c34_i32 = arith.constant 34 : i32
    %1 = vector.broadcast %c34_i32 : i32 to vector<16x128xi32>
    %2 = arith.cmpi eq, %0, %1 : vector<16x128xi32>
    %3 = arith.extui %2 : vector<16x128xi1> to vector<16x128xi32>
    %4 = arith.sitofp %3 : vector<16x128xi32> to vector<16x128xf32>
    %5 = arith.truncf %4 : vector<16x128xf32> to vector<16x128xbf16>
    %c0 = arith.constant 0 : index
    %c0_0 = arith.constant 0 : index
    %6 = vector.load %arg6[%c0, %c0_0] : memref<16x128xbf16, #tpu.memory_space<vmem>>, vector<16x128xbf16>
    tpu.vector_store %arg6[%c0, %c0_0], %5 {strides = array<i32>} : memref<16x128xbf16, #tpu.memory_space<vmem>>, vector<16x128xbf16>,
    %c0_1 = arith.constant 0 : index
    %c0_2 = arith.constant 0 : index
    %7 = vector.load %arg1[%c0_1, %c0_2] : memref<16x34xf32, #tpu.memory_space<vmem>>, vector<16x34xf32>
    %8 = arith.truncf %7 : vector<16x34xf32> to vector<16x34xbf16>
    %c0_3 = arith.constant 0 : index
    %c0_4 = arith.constant 0 : index
    %9 = vector.load %arg6[%c0_3, %c0_4] : memref<16x128xbf16, #tpu.memory_space<vmem>>, vector<16x34xbf16>
    tpu.vector_store %arg6[%c0_3, %c0_4], %8 {strides = array<i32>} : memref<16x128xbf16, #tpu.memory_space<vmem>>, vector<16x34xbf16>,
    %c0_5 = arith.constant 0 : index
    %c0_6 = arith.constant 0 : index
    %10 = vector.load %arg6[%c0_5, %c0_6] : memref<16x128xbf16, #tpu.memory_space<vmem>>, vector<16x128xbf16>
    %c0_7 = arith.constant 0 : index
    %c0_8 = arith.constant 0 : index
    %11 = vector.load %arg2[%c0_7, %c0_8] : memref<128x128xbf16, #tpu.memory_space<vmem>>, vector<128x128xbf16>
    %cst = arith.constant dense<0.000000e+00> : vector<16x128xf32>
    %12 = tpu.matmul %10, %11, %cst {dimension_numbers = #tpu.dot_dimension_numbers<[1], [0], [0], [1], [0, 0, 1, 1], [], []>} : vector<16x128xbf16>, vector<128x128xbf16>, vector<16x128xf32> -> vector<16x128xf32>
    %cst_9 = arith.constant 0.000000e+00 : f32
    %13 = vector.broadcast %cst_9 : f32 to vector<16x128xf32>
    %14 = arith.cmpf ogt, %12, %13 : vector<16x128xf32>
    %cst_10 = arith.constant 2.000000e-01 : f32
    %15 = vector.broadcast %cst_10 : f32 to vector<16x128xf32>
    %16 = arith.mulf %15, %12 : vector<16x128xf32>
    %17 = arith.select %14, %12, %16 : vector<16x128xi1>, vector<16x128xf32>
    %18 = arith.truncf %17 : vector<16x128xf32> to vector<16x128xbf16>
    %c0_11 = arith.constant 0 : index
    %c0_12 = arith.constant 0 : index
    %19 = vector.load %arg3[%c0_11, %c0_12] : memref<128x128xbf16, #tpu.memory_space<vmem>>, vector<128x128xbf16>
    %cst_13 = arith.constant dense<0.000000e+00> : vector<16x128xf32>
    %20 = tpu.matmul %18, %19, %cst_13 {dimension_numbers = #tpu.dot_dimension_numbers<[1], [0], [0], [1], [0, 0, 1, 1], [], []>} : vector<16x128xbf16>, vector<128x128xbf16>, vector<16x128xf32> -> vector<16x128xf32>
    %cst_14 = arith.constant 0.000000e+00 : f32
    %21 = vector.broadcast %cst_14 : f32 to vector<16x128xf32>
    %22 = arith.cmpf ogt, %20, %21 : vector<16x128xf32>
    %cst_15 = arith.constant 2.000000e-01 : f32
    %23 = vector.broadcast %cst_15 : f32 to vector<16x128xf32>
    %24 = arith.mulf %23, %20 : vector<16x128xf32>
    %25 = arith.select %22, %20, %24 : vector<16x128xi1>, vector<16x128xf32>
    %26 = arith.truncf %25 : vector<16x128xf32> to vector<16x128xbf16>
    %c0_16 = arith.constant 0 : index
    %c0_17 = arith.constant 0 : index
    %27 = vector.load %arg4[%c0_16, %c0_17] : memref<128x128xbf16, #tpu.memory_space<vmem>>, vector<128x128xbf16>
    %cst_18 = arith.constant dense<0.000000e+00> : vector<16x128xf32>
    %28 = tpu.matmul %26, %27, %cst_18 {dimension_numbers = #tpu.dot_dimension_numbers<[1], [0], [0], [1], [0, 0, 1, 1], [], []>} : vector<16x128xbf16>, vector<128x128xbf16>, vector<16x128xf32> -> vector<16x128xf32>
    %29 = vector.extract_strided_slice %28 {offsets = [0, 0], sizes = [16, 1], strides = [1, 1]} : vector<16x128xf32> to vector<16x1xf32>
    %30 = arith.negf %29 : vector<16x1xf32>
    %31 = math.exp %30 : vector<16x1xf32>
    %cst_19 = arith.constant 1.000000e+00 : f32
    %32 = vector.broadcast %cst_19 : f32 to vector<16x1xf32>
    %33 = arith.addf %32, %31 : vector<16x1xf32>
    %34 = arith.divf %32, %33 : vector<16x1xf32>
    %c0_20 = arith.constant 0 : index
    %c0_21 = arith.constant 0 : index
    %35 = vector.load %arg5[%c0_20, %c0_21] : memref<16x1xf32, #tpu.memory_space<vmem>>, vector<16x1xf32>
    tpu.vector_store %arg5[%c0_20, %c0_21], %34 {strides = array<i32>} : memref<16x1xf32, #tpu.memory_space<vmem>>, vector<16x1xf32>,
    return
  }
  func.func @transform_0(%arg0: i32) -> (i32, i32) {
    %c0_i32 = arith.constant 0 : i32
    %c0_i32_0 = arith.constant 0 : i32
    return %arg0, %c0_i32 : i32, i32
  }
  func.func @transform_1(%arg0: i32) -> (i32, i32) {
    %c0_i32 = arith.constant 0 : i32
    %c0_i32_0 = arith.constant 0 : i32
    %c0_i32_1 = arith.constant 0 : i32
    return %c0_i32, %c0_i32_0 : i32, i32
  }
  func.func @transform_2(%arg0: i32) -> (i32, i32) {
    %c0_i32 = arith.constant 0 : i32
    %c0_i32_0 = arith.constant 0 : i32
    %c0_i32_1 = arith.constant 0 : i32
    return %c0_i32, %c0_i32_0 : i32, i32
  }
  func.func @transform_3(%arg0: i32) -> (i32, i32) {
    %c0_i32 = arith.constant 0 : i32
    %c0_i32_0 = arith.constant 0 : i32
    %c0_i32_1 = arith.constant 0 : i32
    return %c0_i32, %c0_i32_0 : i32, i32
  }
  func.func @transform_4(%arg0: i32) -> (i32, i32) {
    %c0_i32 = arith.constant 0 : i32
    %c0_i32_0 = arith.constant 0 : i32
    return %arg0, %c0_i32 : i32, i32
  }
}

</mosaic_0001>

<bundles_post_ra>
// kernel: tpu_custom_call.1
= control target key start
LH: loop header
LB: loop body
LE: loop exit
PB: predicated region body
PF: predicated region fallthrough
CT: control target
= control target key end

     0   :  { %9 = vsyncpa [#allocation4], 0  ;;  %s856_s0 = inlined_call_operand.hbm [shape: f32[8,34], index: 0, kind: input, shape index: {}]   ;;  %s857_s1 = inlined_call_operand.hbm [shape: bf16[128,128], index: 1, kind: input, shape index: {}]   ;;  %s858_s2 = inlined_call_operand.hbm [shape: bf16[128,128], index: 2, kind: input, shape index: {}]   ;;  %s859_s3 = inlined_call_operand.hbm [shape: bf16[128,128], index: 3, kind: input, shape index: {}]   ;;  %s860_s4 = inlined_call_operand.vmem [shape: f32[8,1], index: 4, kind: output, shape index: {}]  }
   0x1   :  { %10 = vsyncpa [#allocation6], 0 }
   0x2   :  { %11 = vsyncpa [#allocation9], 0 }
   0x3   :  { %16 = vsyncadd [#allocation4], 128  ;;  %s723_s15 = smov [#allocation5]   ;;  %s629_s19 = scalar_lea.hbm %s857_s1, 1024 }
   0x4   :  { %s29_s16 = sshll.u32 %s723_s15, 4  ;;  %p630_p0 = scmp.ne.s32.totalorder %s857_s1, %s629_s19  ;;  %s30_s16 = int_to_ptr.vmem [resolvable:$true] %s29_s16 }
   0x5   :  { %p633_p1 = scmp.lt.u32.totalorder %s629_s19, %s857_s1 }
   0x7   :  { %p635_p2 = pnand %p633_p1, %p630_p0 }
   0x9   :  { %638 = shalt.err (!%p635_p2)
}
   0xa   :  { %s639_s24 = scalar_lea.vmem %s30_s16, 1024  ;;  %p644_p4 = scmp.lt.s32.totalorder %s30_s16, %s30_s16 }
   0xb   :  { %p640_p3 = scmp.ne.s32.totalorder %s30_s16, %s639_s24  ;;  %p645_p5 = scmp.lt.s32.totalorder %s639_s24, %s639_s24 }
   0xd   :  { %p646_p6 = por %p645_p5, %p644_p4 }
   0xf   :  { %p647_p7 = pnand %p646_p6, %p640_p3 }
  0x11   :  { %650 = shalt.err (!%p647_p7)
}
  0x12   :  { %s724_s25 = smov 64   ;;  %s725_s26 = smov 4  }
  0x13   :  { %35 = dma.hbm_to_vmem [thread:$0]  %s857_s1, 1024, %s30_s16, [#allocation6], %s724_s25, %s724_s25, %s725_s26  }
  0x14   :  { %s726_s29 = smov [#allocation3]   ;;  %s651_s7 = scalar_lea.hbm %s856_s0, 128 }
  0x15   :  { %s17_s30 = sshll.u32 %s726_s29, 4  ;;  %p652_p8 = scmp.ne.s32.totalorder %s856_s0, %s651_s7  ;;  %s18_s30 = int_to_ptr.vmem [resolvable:$true] %s17_s30 }
  0x16   :  { %p655_p9 = scmp.lt.u32.totalorder %s651_s7, %s856_s0 }
  0x18   :  { %p657_p10 = pnand %p655_p9, %p652_p8 }
  0x1a   :  { %660 = shalt.err (!%p657_p10)
}
  0x1b   :  { %s661_s12 = scalar_lea.vmem %s18_s30, 128  ;;  %s665_s1 = scalar_lea.vmem %s18_s30, 256 }
  0x1c   :  { %p662_p11 = scmp.ne.s32.totalorder %s18_s30, %s661_s12  ;;  %p666_p12 = scmp.lt.s32.totalorder %s18_s30, %s18_s30 }
  0x1d   :  { %p667_p13 = scmp.lt.s32.totalorder %s665_s1, %s661_s12 }
  0x1f   :  { %p668_p0 = por %p667_p13, %p666_p12 }
  0x21   :  { %p669_p1 = pnand %p668_p0, %p662_p11 }
  0x23   :  { %672 = shalt.err (!%p669_p1)
}
  0x24   :  { %s727_s13 = smov 128   ;;  %s728_s14 = smov 8  }
  0x25   :  { %23 = dma.hbm_to_vmem [thread:$0]  %s856_s0, 128, %s18_s30, [#allocation4], %s727_s13, %s727_s13, %s728_s14  }
  0x26   :  { %s729_s17 = smov [#allocation7]   ;;  %s730_s19 = smov [#allocation8]  }
  0x27   :  { %s41_s18 = sshll.u32 %s729_s17, 4  ;;  %s53_s20 = sshll.u32 %s730_s19, 4  ;;  %s42_s18 = int_to_ptr.vmem [resolvable:$true] %s41_s18  ;;  %s785_s20 = int_to_ptr.vmem [resolvable:$true] %s53_s20 }
  0x28   :  { %s673_s23 = scalar_lea.hbm %s858_s2, 1024 }
  0x29   :  { %p674_p2 = scmp.ne.s32.totalorder %s858_s2, %s673_s23  ;;  %p677_p3 = scmp.lt.u32.totalorder %s673_s23, %s858_s2 }
  0x2b   :  { %p679_p4 = pnand %p677_p3, %p674_p2 }
  0x2d   :  { %682 = shalt.err (!%p679_p4)
}
  0x2e   :  { %s683_s0 = scalar_lea.vmem %s42_s18, 1024  ;;  %p688_p6 = scmp.lt.s32.totalorder %s42_s18, %s42_s18 }
  0x2f   :  { %p684_p5 = scmp.ne.s32.totalorder %s42_s18, %s683_s0  ;;  %p689_p7 = scmp.lt.s32.totalorder %s683_s0, %s683_s0 }
  0x31   :  { %p690_p8 = por %p689_p7, %p688_p6 }
  0x33   :  { %p691_p9 = pnand %p690_p8, %p684_p5 }
  0x35   :  { %694 = shalt.err (!%p691_p9)
}
  0x36   :  { %47 = dma.hbm_to_vmem [thread:$0]  %s858_s2, 1024, %s42_s18, [#allocation6], %s724_s25, %s724_s25, %s725_s26  }
  0x37   :  { %s695_s8 = scalar_lea.hbm %s859_s3, 1024 }
  0x38   :  { %p696_p10 = scmp.ne.s32.totalorder %s859_s3, %s695_s8  ;;  %p699_p11 = scmp.lt.u32.totalorder %s695_s8, %s859_s3 }
  0x3a   :  { %p701_p12 = pnand %p699_p11, %p696_p10 }
  0x3c   :  { %704 = shalt.err (!%p701_p12)
}
  0x3d   :  { %s705_s1 = scalar_lea.vmem %s785_s20, 1024  ;;  %p710_p0 = scmp.lt.s32.totalorder %s785_s20, %s785_s20 }
  0x3e   :  { %p706_p13 = scmp.ne.s32.totalorder %s785_s20, %s705_s1  ;;  %p711_p1 = scmp.lt.s32.totalorder %s705_s1, %s705_s1 }
  0x40   :  { %p712_p2 = por %p711_p1, %p710_p0 }
  0x42   :  { %p713_p3 = pnand %p712_p2, %p706_p13 }
  0x44   :  { %716 = shalt.err (!%p713_p3)
}
  0x45   :  { %59 = dma.hbm_to_vmem [thread:$0]  %s859_s3, 1024, %s785_s20, [#allocation9], %s724_s25, %s724_s25, %s725_s26  }
  0x46   :  { %717 = dma.done.wait [#allocation4], 256  }
  0x47   :  { %718 = vsyncadd [#allocation4], 4294967040 }
  0x48   :  { %719 = dma.done.wait [#allocation6], 2048  }
  0x49   :  { %720 = vsyncadd [#allocation6], 4294965248 }
  0x4a   :  { %721 = dma.done.wait [#allocation9], 1024  }
  0x4b   :  { %722 = vsyncadd [#allocation9], 4294966272  ;;  %v73_v0 = vlaneseq  ;;  %v731_v1 = vmov 0.0   ;;  %vm732_vm0 = vmmov 0   ;;  %v597_v5 = vld [vmem:[#allocation5] sm:$0xff]   ;;  %v598_v6 = vld [vmem:[#allocation5 + $0x8] sm:$0xff]  }
  0x4c   :  { %527 = vmatprep.subr.bf16.mxu0 %v731_v1  ;;  %543 = vmatprep.mubr.msk.bf16.mxu0 %vm732_vm0, %v731_v1  ;;  %v599_v7 = vld [vmem:[#allocation5 + $0x10] sm:$0xff]   ;;  %v81_v9 = vld [vmem:[#allocation3 + $0x8] sm:$0xff]  ;;  %vm83_vm2 = vcmask 277504   ;;  %v605_v11 = vld [vmem:[#allocation7] sm:$0xff]   ;;  %vm427_vm7 = vcmask 7168  }
  0x4d   :  { %v74_v2 = vand.u32 127, %v73_v0  ;;  %547 = vmatprep.subr.bf16.mxu1 %v731_v1  ;;  %563 = vmatprep.mubr.msk.bf16.mxu1 %vm732_vm0, %v731_v1  ;;  %v80_v8 = vld [vmem:[#allocation3] sm:$0xff]  ;;  %v600_v12 = vld [vmem:[#allocation5 + $0x18] sm:$0xff]   ;;  %v606_v13 = vld [vmem:[#allocation7 + $0x8] sm:$0xff]  }
  0x4e   :  { %528 = vmatpush3.bf16.msra.mxu0 %v597_v5  ;;  %v82_v10 = vpack.c.bf16 %v81_v9, %v80_v8  ;;  %548 = vmatpush3.bf16.msra.mxu1 %v605_v11  ;;  %v601_v14 = vld [vmem:[#allocation5 + $0x20] sm:$0xff]   ;;  %v607_v15 = vld [vmem:[#allocation7 + $0x10] sm:$0xff]   ;;  %v602_v16 = vld [vmem:[#allocation5 + $0x28] sm:$0xff]  }
  0x4f   :  { %vm75_vm1 = vcmp.eq.s32.totalorder %v74_v2, 34  ;;  %529 = vmatprep.subr.bf16.mxu0 %v731_v1  ;;  %549 = vmatprep.subr.bf16.mxu1 %v731_v1  ;;  %v608_v17 = vld [vmem:[#allocation7 + $0x18] sm:$0xff]   ;;  %v603_v18 = vld [vmem:[#allocation5 + $0x30] sm:$0xff]   ;;  %v609_v19 = vld [vmem:[#allocation7 + $0x20] sm:$0xff]  }
  0x50   :  { %v473_v3 = vsel %vm75_vm1, 1.0, %v731_v1  ;;  %v604_v20 = vld [vmem:[#allocation5 + $0x38] sm:$0xff]   ;;  %v610_v21 = vld [vmem:[#allocation7 + $0x28] sm:$0xff]   ;;  %v611_v23 = vld [vmem:[#allocation7 + $0x30] sm:$0xff]  }
  0x51   :  { %v78_v4 = vpack.c.bf16 %v473_v3, %v473_v3  ;;  %v612_v24 = vld [vmem:[#allocation7 + $0x38] sm:$0xff]   ;;  %v613_v25 = vld [vmem:[#allocation8] sm:$0xff]   ;;  %v614_v26 = vld [vmem:[#allocation8 + $0x8] sm:$0xff]  }
  0x52   :  { %530 = vmatpush3.bf16.msra.mxu0 %v598_v6  ;;  %550 = vmatpush3.bf16.msra.mxu1 %v606_v13  ;;  %v615_v27 = vld [vmem:[#allocation8 + $0x10] sm:$0xff]   ;;  %v616_v28 = vld [vmem:[#allocation8 + $0x18] sm:$0xff]   ;;  %v617_v29 = vld [vmem:[#allocation8 + $0x20] sm:$0xff]  }
  0x53   :  { %79 = vst [vmem:[#allocation2] sm:$0xff] %v78_v4  ;;  %531 = vmatprep.subr.bf16.mxu0 %v731_v1  ;;  %551 = vmatprep.subr.bf16.mxu1 %v731_v1  ;;  %v618_v30 = vld [vmem:[#allocation8 + $0x28] sm:$0xff]   ;;  %v619_v40 = vld [vmem:[#allocation8 + $0x30] sm:$0xff]   ;;  %v620_v41 = vld [vmem:[#allocation8 + $0x38] sm:$0xff]  }
  0x54   :  { %84 = vst.msk [vmem:[#allocation2] sm:$0xff] %vm83_vm2, %v82_v10 }
  0x56   :  { %532 = vmatpush3.bf16.msra.mxu0 %v599_v7  ;;  %552 = vmatpush3.bf16.msra.mxu1 %v607_v15 }
  0x57   :  { %533 = vmatprep.subr.bf16.mxu0 %v731_v1  ;;  %553 = vmatprep.subr.bf16.mxu1 %v731_v1 }
  0x5a   :  { %534 = vmatpush3.bf16.msra.mxu0 %v600_v12  ;;  %554 = vmatpush3.bf16.msra.mxu1 %v608_v17 }
  0x5b   :  { %535 = vmatprep.subr.bf16.mxu0 %v731_v1  ;;  %555 = vmatprep.subr.bf16.mxu1 %v731_v1  ;;  %v85_v22 = vld [vmem:[#allocation2] sm:$0xff] }
  0x5e   :  { %536 = vmatpush3.bf16.msra.mxu0 %v601_v14  ;;  %556 = vmatpush3.bf16.msra.mxu1 %v609_v19 }
  0x5f   :  { %537 = vmatprep.subr.bf16.mxu0 %v731_v1  ;;  %557 = vmatprep.subr.bf16.mxu1 %v731_v1 }
  0x62   :  { %538 = vmatpush3.bf16.msra.mxu0 %v602_v16  ;;  %558 = vmatpush3.bf16.msra.mxu1 %v610_v21 }
  0x63   :  { %539 = vmatprep.subr.bf16.mxu0 %v731_v1  ;;  %559 = vmatprep.subr.bf16.mxu1 %v731_v1 }
  0x66   :  { %540 = vmatpush3.bf16.msra.mxu0 %v603_v18  ;;  %560 = vmatpush3.bf16.msra.mxu1 %v611_v23 }
  0x67   :  { %541 = vmatprep.subr.bf16.mxu0 %v731_v1  ;;  %561 = vmatprep.subr.bf16.mxu1 %v731_v1 }
  0x6a   :  { %542 = vmatpush3.bf16.msra.mxu0 %v604_v20  ;;  %562 = vmatpush3.bf16.msra.mxu1 %v612_v24 }
  0x6b   :  { %567 = vmatprep.subr.bf16.mxu0 %v731_v1 }
  0x6d   :  { %544 = vmatmul.mubr.bf16.vlgmr.msra.gmra.mrb[0].mxu0 %v85_v22 }
  0x6e   :  { %583 = vmatprep.mubr.msk.bf16.mxu0 %vm732_vm0, %v731_v1  ;;  %568 = vmatpush3.bf16.msra.mxu0 %v613_v25 }
  0x6f   :  { %569 = vmatprep.subr.bf16.mxu0 %v731_v1 }
  0x72   :  { %570 = vmatpush3.bf16.msra.mxu0 %v614_v26 }
  0x73   :  { %571 = vmatprep.subr.bf16.mxu0 %v731_v1 }
  0x76   :  { %572 = vmatpush3.bf16.msra.mxu0 %v615_v27 }
  0x77   :  { %573 = vmatprep.subr.bf16.mxu0 %v731_v1 }
  0x7a   :  { %574 = vmatpush3.bf16.msra.mxu0 %v616_v28 }
  0x7b   :  { %575 = vmatprep.subr.bf16.mxu0 %v731_v1 }
  0x7e   :  { %576 = vmatpush3.bf16.msra.mxu0 %v617_v29 }
  0x7f   :  { %577 = vmatprep.subr.bf16.mxu0 %v731_v1 }
  0x82   :  { %578 = vmatpush3.bf16.msra.mxu0 %v618_v30 }
  0x83   :  { %579 = vmatprep.subr.bf16.mxu0 %v731_v1 }
  0x86   :  { %580 = vmatpush3.bf16.msra.mxu0 %v619_v40 }
  0x87   :  { %581 = vmatprep.subr.bf16.mxu0 %v731_v1 }
  0x8a   :  { %582 = vmatpush3.bf16.msra.mxu0 %v620_v41 }
 0x140   :  { %v184_v31 = vpop.f32.mrb[0].mxu0 }
 0x141   :  { %v193_v32 = vmul.f32 0.2, %v184_v31  ;;  %v545_v33 = vpop.f32.mrb[1].mxu0  ;;  %vm191_vm3 = vcmp.gt.f32.partialorder %v184_v31, 0.0 }
 0x142   :  { %v187_v34 = vpop.f32.mrb[2].mxu0 }
 0x143   :  { %vm192_vm4 = vcmp.gt.f32.partialorder %v187_v34, 0.0  ;;  %v194_v35 = vmul.f32 0.2, %v187_v34  ;;  %v546_v36 = vpop.f32.mrb[3].mxu0  ;;  %v195_v37 = vsel %vm191_vm3, %v184_v31, %v193_v32 }
 0x145   :  { %v196_v38 = vsel %vm192_vm4, %v187_v34, %v194_v35 }
 0x146   :  { %v197_v39 = vpack.c.bf16 %v196_v38, %v195_v37 }
 0x148   :  { %564 = vmatmul.mubr.bf16.vlgmr.msra.gmra.mrb[0].mxu1 %v197_v39 }
 0x21b   :  { %v296_v42 = vpop.f32.mrb[0].mxu1 }
 0x21c   :  { %v305_v43 = vmul.f32 0.2, %v296_v42  ;;  %v565_v44 = vpop.f32.mrb[1].mxu1  ;;  %vm303_vm5 = vcmp.gt.f32.partialorder %v296_v42, 0.0 }
 0x21d   :  { %v299_v45 = vpop.f32.mrb[2].mxu1 }
 0x21e   :  { %vm304_vm6 = vcmp.gt.f32.partialorder %v299_v45, 0.0  ;;  %v306_v46 = vmul.f32 0.2, %v299_v45  ;;  %v566_v47 = vpop.f32.mrb[3].mxu1  ;;  %v307_v48 = vsel %vm303_vm5, %v296_v42, %v305_v43 }
 0x220   :  { %v308_v49 = vsel %vm304_vm6, %v299_v45, %v306_v46 }
 0x221   :  { %v309_v50 = vpack.c.bf16 %v308_v49, %v307_v48 }
 0x223   :  { %584 = vmatmul.mubr.bf16.vlgmr.msra.gmra.mrb[4].mxu0 %v309_v50 }
 0x2f6   :  { %v408_v51 = vpop.f32.mrb[4].mxu0 }
 0x2f7   :  { %v498_v52 = vmul.f32 -1.442695, %v408_v51  ;;  %v585_v53 = vpop.f32.mrb[5].mxu0 }
 0x2f8   :  { %v411_v54 = vpop.f32.mrb[6].mxu0 }
 0x2f9   :  { %621 = vpow2.f32 %v498_v52  ;;  %v499_v55 = vmul.f32 -1.442695, %v411_v54  ;;  %v586_v56 = vpop.f32.mrb[7].mxu0 }
 0x2fb   :  { %623 = vpow2.f32 %v499_v55 }
 0x303   :  { %v622_v57 = vpop.eup %621 }
 0x304   :  { %v421_v58 = vadd.f32 1.0, %v622_v57 }
 0x305   :  { %v624_v59 = vpop.eup %623 }
 0x306   :  { %625 = vrcp.f32 %v421_v58  ;;  %v422_v60 = vadd.f32 1.0, %v624_v59 }
 0x308   :  { %627 = vrcp.f32 %v422_v60 }
 0x310   :  { %v626_v61 = vpop.eup %625 }
 0x311   :  { %428 = vst.msk [vmem:[#allocation10] sm:$0xff] %vm427_vm7, %v626_v61 }
 0x312   :  { %v628_v62 = vpop.eup %627 }
 0x318   :  { %v459_v63 = vld [vmem:[#allocation10] sm:$0xff] }
 0x319   :  { %460 = vst [vmem:[%s860_s4] sm:$0xff] %v459_v63 }
 0x31a   :  { %466 = vsyncpa [#allocation4], 1 }
 0x31b   :  { %467 = vsyncpa [#allocation6], 1 }
 0x31c   :  { %468 = vsyncpa [#allocation9], 1 }

</bundles_post_ra>
